<compile_context>
chip_gen: v6e
topology: v6e:2x2x1
jax: 0.10.0
libtpu: 0.0.40
codegen_flags: <defaults>
</compile_context>

<pallas_src>
import math

import jax
import jax.numpy as jnp
from jax.experimental import pallas as pl
from jax.experimental.pallas import tpu as pltpu


def _round_up(x, m):
    return (x + m - 1) // m * m


# ---------------------------------------------------------------------------
# Fused Pallas kernel: branch-chained K-tiled matmul + folded-BN + ReLU
# ---------------------------------------------------------------------------
def _fused_aspp_kernel(br_ref, first_ref, last_ref,      # scalar prefetch (SMEM)
                       x_ref, w_ref, s_ref, b_ref,       # VMEM input tiles
                       o_ref,                            # VMEM output tile
                       acc_ref):                         # f32 VMEM accumulator
    s = pl.program_id(1)

    @pl.when(first_ref[s] == 1)
    def _():
        acc_ref[...] = jnp.zeros_like(acc_ref)

    acc_ref[...] += jnp.dot(x_ref[...], w_ref[...],
                            preferred_element_type=jnp.float32)

    @pl.when(last_ref[s] == 1)
    def _():
        y = acc_ref[...] * s_ref[0] + b_ref[0]
        o_ref[0] = jnp.maximum(y, 0.0).astype(o_ref.dtype)


def fused_conv_bn_relu(x2d, w2d, scale, bias, branch_ids, firsts, lasts,
                       n_branches, tm, tk):
    """x2d:(M_pad,K_tot) bf16, w2d:(K_tot,Cout) bf16, scale/bias:(B,1,Cout) f32
       -> (B, M_pad, Cout) f32"""
    M_pad, K_tot = x2d.shape
    Cout = w2d.shape[1]
    S = branch_ids.shape[0]
    assert M_pad % tm == 0 and K_tot == S * tk

    return pl.pallas_call(
        _fused_aspp_kernel,
        out_shape=jax.ShapeDtypeStruct((n_branches, M_pad, Cout), jnp.float32),
        grid_spec=pltpu.PrefetchScalarGridSpec(
            num_scalar_prefetch=3,
            grid=(M_pad // tm, S),
            in_specs=[
                pl.BlockSpec((tm, tk), lambda i, s, br, fr, lr: (i, s)),
                pl.BlockSpec((tk, Cout), lambda i, s, br, fr, lr: (s, 0)),
                pl.BlockSpec((1, 1, Cout), lambda i, s, br, fr, lr: (br[s], 0, 0)),
                pl.BlockSpec((1, 1, Cout), lambda i, s, br, fr, lr: (br[s], 0, 0)),
            ],
            out_specs=pl.BlockSpec((1, tm, Cout),
                                   lambda i, s, br, fr, lr: (br[s], i, 0)),
            scratch_shapes=[pltpu.VMEM((tm, Cout), jnp.float32)],
        ),
        compiler_params=pltpu.CompilerParams(
            dimension_semantics=("parallel", "arbitrary"),
            vmem_limit_bytes=48 * 1024 * 1024),
    )(branch_ids, firsts, lasts, x2d, w2d, scale, bias)


# ---------------------------------------------------------------------------
# Glue: im2col (dilated, padding == dilation, stride 1) and weight reshaping
# ---------------------------------------------------------------------------
def _im2col(x_nhwc, ksize, dilation):
    N, H, W, C = x_nhwc.shape
    if ksize == 1:
        return x_nhwc.reshape(N * H * W, C)
    d = dilation
    xp = jnp.pad(x_nhwc, ((0, 0), (d, d), (d, d), (0, 0)))
    taps = []
    for kh in range(ksize):
        for kw in range(ksize):
            taps.append(xp[:, kh * d:kh * d + H, kw * d:kw * d + W, :])
    patches = jnp.stack(taps, axis=3)                    # (N,H,W,k*k,C)
    return patches.reshape(N * H * W, ksize * ksize * C)


def _weight_to_2d(w_oihw, ksize):
    # torch layout (Cout, Cin, kh, kw) -> (kh*kw*Cin, Cout), tap-major (kh, kw)
    cout, cin = w_oihw.shape[0], w_oihw.shape[1]
    return jnp.transpose(w_oihw, (2, 3, 1, 0)).reshape(ksize * ksize * cin, cout)


def _bn_fold(gamma, beta, mean, var, eps=1e-5):
    scale = gamma / jnp.sqrt(var + eps)
    bias = beta - mean * scale
    return scale, bias


# ---------------------------------------------------------------------------
# ASPP forward
# ---------------------------------------------------------------------------
def aspp_forward(x_nchw, params, dilations, tm=256, tk=512):
    N, Cin, H, W = x_nchw.shape
    ksizes = [1, 3, 3, 3]
    Cout = params["branches"][0][0].shape[0]
    M = N * H * W

    x_nhwc = jnp.transpose(x_nchw, (0, 2, 3, 1))
    x_bf16 = x_nhwc.astype(jnp.bfloat16)

    # ---- tile selection --------------------------------------------------
    Ks = [k * k * Cin for k in ksizes]
    tk = _round_up(min(tk, _round_up(max(Ks), 128)), 128)   # lane-aligned K tile
    tm = min(tm, _round_up(M, 16))                          # bf16 sublane packing
    M_pad = _round_up(M, tm)

    # ---- build branch-concatenated bf16 patch / weight matrices ----------
    x_chunks, w_chunks, scales, biases = [], [], [], []
    branch_ids, firsts, lasts = [], [], []
    for b, (w, gamma, beta, mean, var) in enumerate(params["branches"]):
        k, d = ksizes[b], dilations[b]
        Kb = Ks[b]
        Kb_pad = _round_up(Kb, tk)
        nk = Kb_pad // tk

        p = _im2col(x_bf16, k, d)                            # (M, Kb) bf16
        p = jnp.pad(p, ((0, M_pad - M), (0, Kb_pad - Kb)))
        x_chunks.append(p)

        w2d = _weight_to_2d(w, k)                            # (Kb, Cout) f32
        w2d = jnp.pad(w2d, ((0, Kb_pad - Kb), (0, 0)))       # zero pad rows
        w_chunks.append(w2d.astype(jnp.bfloat16))

        sc, bi = _bn_fold(gamma, beta, mean, var)
        scales.append(sc.reshape(1, 1, Cout))
        biases.append(bi.reshape(1, 1, Cout))

        branch_ids += [b] * nk
        firsts += [1] + [0] * (nk - 1)
        lasts += [0] * (nk - 1) + [1]

    x2d = jnp.concatenate(x_chunks, axis=1)                  # (M_pad, K_tot)
    w2d = jnp.concatenate(w_chunks, axis=0)                  # (K_tot, Cout)
    scale = jnp.concatenate(scales, axis=0)                  # (4, 1, Cout)
    bias = jnp.concatenate(biases, axis=0)

    branch_ids = jnp.asarray(branch_ids, jnp.int32)
    firsts = jnp.asarray(firsts, jnp.int32)
    lasts = jnp.asarray(lasts, jnp.int32)

    out4 = fused_conv_bn_relu(x2d, w2d, scale, bias,
                              branch_ids, firsts, lasts,
                              n_branches=4, tm=tm, tk=tk)    # (4, M_pad, Cout)
    out4 = out4[:, :M].reshape(4, N, H, W, Cout)
    out4 = jnp.transpose(out4, (1, 0, 4, 2, 3)).reshape(N, 4 * Cout, H, W)

    # ---- global_avg_pool branch (tiny M == N): plain XLA ------------------
    wg, gg, bg, mg, vg = params["gap"]
    pooled = jnp.mean(x_nhwc, axis=(1, 2))                   # (N, Cin) f32
    wg2d = _weight_to_2d(wg, 1)
    sc, bi = _bn_fold(gg, bg, mg, vg)
    y5 = jnp.maximum(jnp.dot(pooled, wg2d) * sc + bi, 0.0)   # (N, Cout)
    # bilinear upsample of a 1x1 map with align_corners=True == broadcast
    y5 = jnp.broadcast_to(y5[:, :, None, None], (N, Cout, H, W))

    return jnp.concatenate([out4, y5], axis=1)               # (N, 5*Cout, H, W)


# ---------------------------------------------------------------------------
# Pure-JAX reference (f32, lax.conv) for correctness check
# ---------------------------------------------------------------------------
def _reference_forward(x_nchw, params, dilations, eps=1e-5):
    N, Cin, H, W = x_nchw.shape
    ksizes = [1, 3, 3, 3]
    outs = []
    for b, (w, gamma, beta, mean, var) in enumerate(params["branches"]):
        k, d = ksizes[b], dilations[b]
        pad = 0 if k == 1 else d
        y = jax.lax.conv_general_dilated(
            x_nchw, w, window_strides=(1, 1),
            padding=[(pad, pad), (pad, pad)], rhs_dilation=(d, d),
            dimension_numbers=("NCHW", "OIHW", "NCHW"))
        sc = (gamma / jnp.sqrt(var + eps)).reshape(1, -1, 1, 1)
        bi = (beta - mean * gamma / jnp.sqrt(var + eps)).reshape(1, -1, 1, 1)
        outs.append(jnp.maximum(y * sc + bi, 0.0))
    wg, gg, bg, mg, vg = params["gap"]
    pooled = jnp.mean(x_nchw, axis=(2, 3), keepdims=True)
    y5 = jax.lax.conv_general_dilated(
        pooled, wg, (1, 1), "VALID",
        dimension_numbers=("NCHW", "OIHW", "NCHW"))
    sc = (gg / jnp.sqrt(vg + eps)).reshape(1, -1, 1, 1)
    bi = (bg - mg * gg / jnp.sqrt(vg + eps)).reshape(1, -1, 1, 1)
    y5 = jnp.maximum(y5 * sc + bi, 0.0)
    outs.append(jnp.broadcast_to(y5, (N, y5.shape[1], H, W)))
    return jnp.concatenate(outs, axis=1)


# ---------------------------------------------------------------------------
# Deterministic parameter init matching ASPP_module._init_weight
# ---------------------------------------------------------------------------
def init_params(key, inplanes, planes):
    keys = jax.random.split(key, 5)
    ksizes = [1, 3, 3, 3]
    branches = []
    for i in range(4):
        k = ksizes[i]
        std = math.sqrt(2.0 / (k * k * planes))
        w = std * jax.random.normal(keys[i], (planes, inplanes, k, k), jnp.float32)
        branches.append((w,
                         jnp.ones((planes,), jnp.float32),
                         jnp.zeros((planes,), jnp.float32),
                         jnp.zeros((planes,), jnp.float32),
                         jnp.ones((planes,), jnp.float32)))
    std = math.sqrt(2.0 / (1 * 1 * planes))
    wg = std * jax.random.normal(keys[4], (planes, inplanes, 1, 1), jnp.float32)
    gap = (wg,
           jnp.ones((planes,), jnp.float32),
           jnp.zeros((planes,), jnp.float32),
           jnp.zeros((planes,), jnp.float32),
           jnp.ones((planes,), jnp.float32))
    return {"branches": branches, "gap": gap}


if __name__ == "__main__":
    inplanes, planes = 8, 8
    N, H, W = 2, 16, 16
    os_ = 16
    dilations = [1, 6, 12, 18] if os_ == 16 else [1, 12, 24, 36]

    root = jax.random.PRNGKey(0)
    k_x, k_p = jax.random.split(root)
    x = jax.random.normal(k_x, (N, inplanes, H, W), jnp.float32)
    params = init_params(k_p, inplanes, planes)

    out = jax.block_until_ready(aspp_forward(x, params, dilations))
    assert out.shape == (N, 5 * planes, H, W), out.shape
    assert bool(jnp.all(jnp.isfinite(out)))

    # correctness vs f32 XLA reference (loose tol: bf16 MXU inputs)
    ref = jax.block_until_ready(_reference_forward(x, params, dilations))
    max_err = float(jnp.max(jnp.abs(out - ref)))
    assert jnp.allclose(out, ref, rtol=5e-2, atol=2e-1), max_err

    print("KERNEL_OK")
</pallas_src>

<mosaic_0001>
module attributes {stable_mosaic.version = 11 : i64} {
  func.func @_fused_aspp_kernel(%arg0: i32, %arg1: i32, %arg2: memref<4xi32, #tpu.memory_space<smem>>, %arg3: memref<4xi32, #tpu.memory_space<smem>>, %arg4: memref<4xi32, #tpu.memory_space<smem>>, %arg5: memref<256x128xbf16, #tpu.memory_space<vmem>>, %arg6: memref<128x8xbf16, #tpu.memory_space<vmem>>, %arg7: memref<1x1x8xf32, #tpu.memory_space<vmem>>, %arg8: memref<1x1x8xf32, #tpu.memory_space<vmem>>, %arg9: memref<1x256x8xf32, #tpu.memory_space<vmem>>, %arg10: memref<256x8xf32, #tpu.memory_space<vmem>>) attributes {dimension_semantics = [#tpu.dimension_semantics<parallel>, #tpu.dimension_semantics<arbitrary>], iteration_bounds = array<i64: 2, 4>, scalar_prefetch = 3 : i64, scratch_operands = 1 : i64, tpu.core_type = #tpu.core_type<tc>, window_params = [{transform_indices = @transform_0, window_bounds = array<i64: 256, 128>}, {transform_indices = @transform_1, window_bounds = array<i64: 128, 8>}, {transform_indices = @transform_2, window_bounds = array<i64: 1, 1, 8>}, {transform_indices = @transform_3, window_bounds = array<i64: 1, 1, 8>}, {transform_indices = @transform_4, window_bounds = array<i64: 1, 256, 8>}]} {
    %0 = arith.index_cast %arg1 : i32 to index
    %1 = memref.load %arg3[%0] : memref<4xi32, #tpu.memory_space<smem>>
    %c1_i32 = arith.constant 1 : i32
    %2 = arith.cmpi eq, %1, %c1_i32 : i32
    %3 = arith.extui %2 : i1 to i32
    %c0_i32 = arith.constant 0 : i32
    %4 = arith.cmpi ne, %3, %c0_i32 : i32
    scf.if %4 {
      %cst_9 = arith.constant 0.000000e+00 : f32
      %16 = vector.broadcast %cst_9 : f32 to vector<256x8xf32>
      %c0_10 = arith.constant 0 : index
      %c0_11 = arith.constant 0 : index
      %17 = vector.load %arg10[%c0_10, %c0_11] : memref<256x8xf32, #tpu.memory_space<vmem>>, vector<256x8xf32>
      tpu.vector_store %arg10[%c0_10, %c0_11], %16 {strides = array<i32>} : memref<256x8xf32, #tpu.memory_space<vmem>>, vector<256x8xf32>,
    } else {
    }
    %c0 = arith.constant 0 : index
    %c0_0 = arith.constant 0 : index
    %5 = vector.load %arg10[%c0, %c0_0] : memref<256x8xf32, #tpu.memory_space<vmem>>, vector<256x8xf32>
    %c0_1 = arith.constant 0 : index
    %c0_2 = arith.constant 0 : index
    %6 = vector.load %arg5[%c0_1, %c0_2] : memref<256x128xbf16, #tpu.memory_space<vmem>>, vector<256x128xbf16>
    %c0_3 = arith.constant 0 : index
    %c0_4 = arith.constant 0 : index
    %7 = vector.load %arg6[%c0_3, %c0_4] : memref<128x8xbf16, #tpu.memory_space<vmem>>, vector<128x8xbf16>
    %cst = arith.constant dense<0.000000e+00> : vector<256x8xf32>
    %8 = tpu.matmul %6, %7, %cst {dimension_numbers = #tpu.dot_dimension_numbers<[1], [0], [0], [1], [0, 0, 1, 1], [], []>} : vector<256x128xbf16>, vector<128x8xbf16>, vector<256x8xf32> -> vector<256x8xf32>
    %9 = arith.addf %5, %8 : vector<256x8xf32>
    %c0_5 = arith.constant 0 : index
    %c0_6 = arith.constant 0 : index
    %10 = vector.load %arg10[%c0_5, %c0_6] : memref<256x8xf32, #tpu.memory_space<vmem>>, vector<256x8xf32>
    tpu.vector_store %arg10[%c0_5, %c0_6], %9 {strides = array<i32>} : memref<256x8xf32, #tpu.memory_space<vmem>>, vector<256x8xf32>,
    %11 = arith.index_cast %arg1 : i32 to index
    %12 = memref.load %arg4[%11] : memref<4xi32, #tpu.memory_space<smem>>
    %c1_i32_7 = arith.constant 1 : i32
    %13 = arith.cmpi eq, %12, %c1_i32_7 : i32
    %14 = arith.extui %13 : i1 to i32
    %c0_i32_8 = arith.constant 0 : i32
    %15 = arith.cmpi ne, %14, %c0_i32_8 : i32
    scf.if %15 {
      %c0_9 = arith.constant 0 : index
      %c0_10 = arith.constant 0 : index
      %16 = vector.load %arg10[%c0_9, %c0_10] : memref<256x8xf32, #tpu.memory_space<vmem>>, vector<256x8xf32>
      %c0_11 = arith.constant 0 : index
      %c0_12 = arith.constant 0 : index
      %c0_13 = arith.constant 0 : index
      %17 = vector.load %arg7[%c0_11, %c0_12, %c0_13] : memref<1x1x8xf32, #tpu.memory_space<vmem>>, vector<1x1x8xf32>
      %18 = vector.shape_cast %17 : vector<1x1x8xf32> to vector<1x8xf32>
      %19 = vector.broadcast %18 : vector<1x8xf32> to vector<256x8xf32>
      %20 = arith.mulf %16, %19 : vector<256x8xf32>
      %c0_14 = arith.constant 0 : index
      %c0_15 = arith.constant 0 : index
      %c0_16 = arith.constant 0 : index
      %21 = vector.load %arg8[%c0_14, %c0_15, %c0_16] : memref<1x1x8xf32, #tpu.memory_space<vmem>>, vector<1x1x8xf32>
      %22 = vector.shape_cast %21 : vector<1x1x8xf32> to vector<1x8xf32>
      %23 = vector.broadcast %22 : vector<1x8xf32> to vector<256x8xf32>
      %24 = arith.addf %20, %23 : vector<256x8xf32>
      %cst_17 = arith.constant 0.000000e+00 : f32
      %25 = vector.broadcast %cst_17 : f32 to vector<256x8xf32>
      %26 = arith.maximumf %24, %25 : vector<256x8xf32>
      %c0_18 = arith.constant 0 : index
      %c0_19 = arith.constant 0 : index
      %c0_20 = arith.constant 0 : index
      %27 = vector.load %arg9[%c0_18, %c0_19, %c0_20] : memref<1x256x8xf32, #tpu.memory_space<vmem>>, vector<1x256x8xf32>
      %28 = vector.shape_cast %27 : vector<1x256x8xf32> to vector<256x8xf32>
      %29 = vector.shape_cast %26 : vector<256x8xf32> to vector<1x256x8xf32>
      tpu.vector_store %arg9[%c0_18, %c0_19, %c0_20], %29 {strides = array<i32>} : memref<1x256x8xf32, #tpu.memory_space<vmem>>, vector<1x256x8xf32>,
    } else {
    }
    return
  }
  func.func @transform_0(%arg0: i32, %arg1: i32, %arg2: memref<4xi32, #tpu.memory_space<smem>>, %arg3: memref<4xi32, #tpu.memory_space<smem>>, %arg4: memref<4xi32, #tpu.memory_space<smem>>) -> (i32, i32) {
    %c0_i32 = arith.constant 0 : i32
    return %arg0, %arg1 : i32, i32
  }
  func.func @transform_1(%arg0: i32, %arg1: i32, %arg2: memref<4xi32, #tpu.memory_space<smem>>, %arg3: memref<4xi32, #tpu.memory_space<smem>>, %arg4: memref<4xi32, #tpu.memory_space<smem>>) -> (i32, i32) {
    %c0_i32 = arith.constant 0 : i32
    %c0_i32_0 = arith.constant 0 : i32
    return %arg1, %c0_i32 : i32, i32
  }
  func.func @transform_2(%arg0: i32, %arg1: i32, %arg2: memref<4xi32, #tpu.memory_space<smem>>, %arg3: memref<4xi32, #tpu.memory_space<smem>>, %arg4: memref<4xi32, #tpu.memory_space<smem>>) -> (i32, i32, i32) {
    %0 = arith.index_cast %arg1 : i32 to index
    %1 = memref.load %arg2[%0] : memref<4xi32, #tpu.memory_space<smem>>
    %c0_i32 = arith.constant 0 : i32
    %c0_i32_0 = arith.constant 0 : i32
    %c0_i32_1 = arith.constant 0 : i32
    return %1, %c0_i32, %c0_i32_0 : i32, i32, i32
  }
  func.func @transform_3(%arg0: i32, %arg1: i32, %arg2: memref<4xi32, #tpu.memory_space<smem>>, %arg3: memref<4xi32, #tpu.memory_space<smem>>, %arg4: memref<4xi32, #tpu.memory_space<smem>>) -> (i32, i32, i32) {
    %0 = arith.index_cast %arg1 : i32 to index
    %1 = memref.load %arg2[%0] : memref<4xi32, #tpu.memory_space<smem>>
    %c0_i32 = arith.constant 0 : i32
    %c0_i32_0 = arith.constant 0 : i32
    %c0_i32_1 = arith.constant 0 : i32
    return %1, %c0_i32, %c0_i32_0 : i32, i32, i32
  }
  func.func @transform_4(%arg0: i32, %arg1: i32, %arg2: memref<4xi32, #tpu.memory_space<smem>>, %arg3: memref<4xi32, #tpu.memory_space<smem>>, %arg4: memref<4xi32, #tpu.memory_space<smem>>) -> (i32, i32, i32) {
    %0 = arith.index_cast %arg1 : i32 to index
    %1 = memref.load %arg2[%0] : memref<4xi32, #tpu.memory_space<smem>>
    %c0_i32 = arith.constant 0 : i32
    %c0_i32_0 = arith.constant 0 : i32
    return %1, %arg0, %c0_i32 : i32, i32, i32
  }
}

</mosaic_0001>

<bundles_post_ra>
// kernel: tpu_custom_call.1
= control target key start
LH: loop header
LB: loop body
LE: loop exit
PB: predicated region body
PF: predicated region fallthrough
CT: control target
= control target key end

     0   :  { %s1939_s0 = inlined_call_operand.vmem [shape: s32[4], index: 0, kind: input, shape index: {}]   ;;  %s1940_s3 = inlined_call_operand.hbm [shape: bf16[512,512], index: 3, kind: input, shape index: {}]   ;;  %s1941_s4 = inlined_call_operand.vmem [shape: bf16[512,8], index: 4, kind: input, shape index: {}]   ;;  %s1942_s5 = inlined_call_operand.vmem [shape: f32[4,1,8], index: 5, kind: input, shape index: {}]   ;;  %s1943_s6 = inlined_call_operand.vmem [shape: f32[4,1,8], index: 6, kind: input, shape index: {}]   ;;  %s1944_s7 = inlined_call_operand.vmem [shape: f32[4,512,8], index: 7, kind: output, shape index: {}]   ;;  %s1945_s1 = inlined_call_operand.vmem [shape: s32[4], index: 1, kind: input, shape index: {}]   ;;  %s1946_s2 = inlined_call_operand.vmem [shape: s32[4], index: 2, kind: input, shape index: {}]  }
   0x1   :  { %1950 = sst [smem:[#allocation14_spill]] %s1940_s3  ;;  %s12_s26 = sshll.u32 %s1939_s0, 4  ;;  %s13_s26 = int_to_ptr.vmem [resolvable:$true] %s12_s26 }
   0x2   :  { %s16_s29 = sshll.u32 %s1945_s1, 4  ;;  %s1366_s30 = scalar_lea.vmem %s13_s26, 16  ;;  %s17_s29 = int_to_ptr.vmem [resolvable:$true] %s16_s29 }
   0x3   :  { %p1367_p0 = scmp.ne.s32.totalorder %s13_s26, %s1366_s30  ;;  %p1371_p1 = scmp.lt.s32.totalorder %s13_s26, %s13_s26 }
   0x4   :  { %p1372_p2 = scmp.lt.s32.totalorder %s1366_s30, %s1366_s30 }
   0x6   :  { %p1373_p3 = por %p1372_p2, %p1371_p1 }
   0x8   :  { %p1374_p4 = pnand %p1373_p3, %p1367_p0 }
   0xa   :  { %1377 = shalt.err (!%p1374_p4)  }
   0xb   :  { %s1500_s8 = smov [#allocation4]   ;;  %s1378_s9 = scalar_lea.vmem %s17_s29, 16 }
   0xc   :  { %15 = dma.vmem_to_smem %s13_s26, 16, %s1500_s8, [#allocation3] }
   0xd   :  { %p1379_p5 = scmp.ne.s32.totalorder %s17_s29, %s1378_s9  ;;  %p1383_p6 = scmp.lt.s32.totalorder %s17_s29, %s17_s29 }
   0xe   :  { %p1384_p7 = scmp.lt.s32.totalorder %s1378_s9, %s1378_s9 }
  0x10   :  { %p1385_p8 = por %p1384_p7, %p1383_p6 }
  0x12   :  { %p1386_p9 = pnand %p1385_p8, %p1379_p5 }
  0x14   :  { %1389 = shalt.err (!%p1386_p9)  }
  0x15   :  { %s1501_s0 = smov [#allocation5]   ;;  %s20_s11 = sshll.u32 %s1946_s2, 4  ;;  %s21_s11 = int_to_ptr.vmem [resolvable:$true] %s20_s11 }
  0x16   :  { %19 = dma.vmem_to_smem %s17_s29, 16, %s1501_s0, [#allocation3] }
  0x17   :  { %s1390_s12 = scalar_lea.vmem %s21_s11, 16  ;;  %p1395_p11 = scmp.lt.s32.totalorder %s21_s11, %s21_s11 }
  0x18   :  { %p1391_p10 = scmp.ne.s32.totalorder %s21_s11, %s1390_s12  ;;  %p1396_p12 = scmp.lt.s32.totalorder %s1390_s12, %s1390_s12 }
  0x1a   :  { %p1397_p13 = por %p1396_p12, %p1395_p11 }
  0x1c   :  { %p1398_p0 = pnand %p1397_p13, %p1391_p10 }
  0x1e   :  { %1401 = shalt.err (!%p1398_p0)  }
  0x1f   :  { %s1502_s13 = smov [#allocation6]  }
  0x20   :  { %23 = dma.vmem_to_smem %s21_s11, 16, %s1502_s13, [#allocation3] }
  0x21   :  { %1462 = dma.done.wait [#allocation3], 48 }
  0x22   :  { %1463 = vsyncadd [#allocation3], 4294967248 }
  0x23   :  { %25 = sfence }
  0x24   :  { %26 = vsyncpa [#allocation8], 0 }
  0x25   :  { %28 = vsyncpa [#allocation8 + $0x1], 0  ;;  %s1557_s14 = smov 0   ;;  %s1559_s15 = smov 0  }
  0x26   :  { %s1561_s2 = smov 0   ;;  %s1563_s16 = smov 0  }
  0x27   :  { %s1565_s17 = smov 0   ;;  %s1567_s18 = smov 0  }
  0x28   :  { %s1569_s19 = smov 0   ;;  %s1571_s20 = smov 0  }
  0x29 LB: > { %1951 = sst [smem:[#allocation11_spill]] %s1494_s19  ;;  %s1130_s21 = sadd.s32 4294967295, %s1498_s20   ;;  %s1498_s20 = sphi %s1571_s20, %s34_s20   ;;  %s1494_s19 = sphi %s1569_s19, %s1960_s19   ;;  %s1490_s18 = sphi %s1567_s18, %s1965_s18   ;;  %s1486_s17 = sphi %s1565_s17, %s1958_s17   ;;  %s1482_s16 = sphi %s1563_s16, %s1964_s16   ;;  %s1478_s2 = sphi %s1561_s2, %s1963_s2   ;;  %s1474_s15 = sphi %s1559_s15, %s1962_s15   ;;  %s1470_s14 = sphi %s1557_s14, %s1961_s14  }
  0x2a   : > { %s43_s22 = sadd.s32 1, %s1490_s18  ;;  %s46_s23 = sadd.s32 1, %s1494_s19 }
  0x2b   : > { %p44_p1 = scmp.ge.s32.totalorder %s43_s22, 4  ;;  %s55_s24 = sadd.s32 1, %s1478_s2 }
  0x2c   : > { %p62_p2 = scmp.ne.s32.totalorder %s1478_s2, %s1474_s15  ;;  %p63_p3 = scmp.eq.s32.totalorder %s1498_s20, 0 }
  0x2d   : > { %s1967_s22 = smov (%p44_p1, %s43_s22), 0  ;;  %s1969_s23 = smov (!%p44_p1, %s46_s23), %s1494_s19 }
  0x2e   : > { %1952 = sst [smem:[#allocation12_spill]] %s1967_s22  ;;  %s51_s25 = ssub.s32 %s1490_s18, %s1967_s22 }
  0x2f   : > { %p48_p4 = scmp.ge.s32.totalorder %s1969_s23, 2  ;;  %p68_p5 = scmp.ne.s32.totalorder %s1474_s15, %s1470_s14 }
  0x30   : > { %p1608_p6 = por %p63_p3, %p62_p2  ;;  %p69_p7 = scmp.eq.s32.totalorder %s1130_s21, 0 }
  0x31   : > { %s1971_s23 = smov (%p48_p4, %s1969_s23), 0  ;;  %p1270_p9 = scmp.lt.s32.totalorder %s1498_s20, 8 }
  0x32   : > { %1954 = sst [smem:[#allocation13_spill]] %s1971_s23  ;;  %p1614_p8 = por %p69_p7, %p68_p5 }
  0x33   : > { %s50_s28 = ssub.s32 %s1494_s19, %s1971_s23  ;;  %s204_s30 = sand.u32 1, %s1478_s2  }
  0x34   : > { %s52_s29 = sor.u32 %s51_s25, %s50_s28  ;;  %s1134_s8 = sshll.u32 %s204_s30, 7 }
  0x35   : > { %p53_p10 = scmp.eq.s32.totalorder %s52_s29, 0  ;;  %s1175_s9 = sshll.u32 %s1494_s19, 7 }
  0x36   : > { %s214_s1 = sadd.s32 %s1490_s18, %s1175_s9  ;;  %s208_s11 = scalar_lea.vmem [#allocation7], %s1134_s8 }
  0x37   : > { %s1624_s0 = scalar_select %p53_p10, %s1478_s2, %s55_s24  }
  0x38   : > { %s1137_s10 = sshll.u32 %s214_s1, 6  ;;  %s217_s12 = sshll.u32 %s208_s11, 4  ;;  %s218_s12 = int_to_ptr.vmem [resolvable:$true] %s217_s12 }
  0x39   : > { %s1956_s3 = sld [smem:[#allocation14_spill]]  ;;  %p1634_p11 = pnand %p1270_p9, %p1608_p6 }
  0x3a   : > { %p1138_p12 = scmp.ge.s32.totalorder %s1498_s20, 1  ;;  %s205_s25 = scalar_lea.sflag [#allocation8], %s204_s30 }
  0x3b   : > { %p1404_p13 = pneg %p1634_p11  ;;  %s1415_s24 = scalar_lea.vmem %s218_s12, 2048 }
  0x3c   : > { %p1416_p0 = scmp.ne.s32.totalorder %s218_s12, %s1415_s24  ;;  %s1503_s28 = smov [#allocation7]  }
  0x3d   : > { %s1420_s29 = sshll.u32 %s1503_s28, 4  ;;  %s1421_s29 = int_to_ptr.vmem [resolvable:$false] %s1420_s29 }
  0x3e   : > { %p1418_p1 = pnand %p1416_p0, %p1404_p13  ;;  %s1422_s8 = scalar_lea.vmem %s1421_s29, 4096 }
  0x3f   : > { %s216_s21 = scalar_lea.hbm %s1956_s3, %s1137_s10  ;;  %p1423_p3 = scmp.lt.s32.totalorder %s218_s12, %s1421_s29 }
  0x40   : > { %p1419_p2 = pneg %p1418_p1  ;;  %p1424_p4 = scmp.lt.s32.totalorder %s1422_s8, %s1415_s24 }
  0x42   : > { %p1425_p5 = por %p1424_p4, %p1423_p3 }
  0x44   : > { %p1426_p6 = pnand %p1425_p5, %p1419_p2 }
  0x46   : > { %1429 = shalt.err (!%p1426_p6)
}
  0x47   : > { %s1504_s26 = smov 256   ;;  %s1505_s30 = smov 64  }
  0x48   : > { %s1506_s9 = smov 4   ;;  %p250_p7 = scmp.lt.s32.totalorder %s1498_s20, 9 }
  0x49   : > { %1269 = dma.hbm_to_vmem [thread:$0]  (!%p1634_p11), %s216_s21, 2048, %s218_s12, %s205_s25, %s1504_s26, %s1505_s30, %s1506_s9  }
  0x4a   : > { %p251_p9 = pnand %p1138_p12, %p250_p7 }
  0x4b   : > { %s256_s1 = sand.u32 (!%p251_p9), 1, %s1474_s15  }
  0x4c   : > { %254 = sbr.rel (%p251_p9) target bundleno = 408 (0x198), region = 36  ;;  %s1139_s10 = sshll.u32 (!%p251_p9), %s256_s1, 7 }
  0x4d   : > { %s257_s11 = scalar_lea.sflag (!%p251_p9), [#allocation8], %s256_s1  ;;  %s1647_s13 = scalar_lea.vmem (!%p251_p9), [#allocation7], %s1139_s10 }
  0x51   : > { %1465 = dma.done.wait (%p1614_p8), %s257_s11, 2048  }
  0x52   : > { %1467 = vsyncadd (%p1614_p8), %s257_s11, 4294965248  ;;  %s1142_s23 = sshll.u32 %s1486_s17, 5  ;;  %s1140_s12 = sshll.u32 %s1482_s16, 4 }
  0x53   : > { %s310_s14 = sld [smem:[#allocation4 + %s1482_s16]]  ;;  %p324_p10 = scmp.lt.s32.totalorder %s1142_s23, 63 }
  0x54   : > { %s315_s21 = sld [smem:[#allocation4 + %s1482_s16]]  ;;  %p305_p11 = scmp.lt.s32.totalorder %s1140_s12, 63 }
  0x55   : > { %s320_s25 = sld [smem:[#allocation4 + %s1482_s16]]  ;;  %s1973_s23 = smov (!%p324_p10, %s1142_s23), 63 }
  0x56   : > { %s333_s24 = sld [smem:[#allocation5 + %s1482_s16]]  ;;  %s1975_s12 = smov (!%p305_p11, %s1140_s12), 63 }
  0x57   : > { %s1141_s27 = sshll.u32 %s1975_s12, 2 }
  0x58   : > { %s1674_s10 = scalar_lea.vmem %s1941_s4, %s1141_s27 }
  0x59   : > { %p311_p12 = scmp.lt.s32.totalorder %s310_s14, 3 }
  0x5a   : > { %p316_p13 = scmp.lt.s32.totalorder %s315_s21, 3 }
  0x5b   : > { %s1977_s14 = smov (!%p311_p12, %s310_s14), 3  ;;  %p322_p8 = scmp.lt.s32.totalorder %s320_s25, 3 }
  0x5c   : > { %s1979_s21 = smov (!%p316_p13, %s315_s21), 3  ;;  %s313_s17 = scalar_lea.vmem %s1942_s5, %s1977_s14 }
  0x5d   : > { %s318_s30 = scalar_lea.vmem %s1943_s6, %s1979_s21  ;;  %s1981_s25 = smov (!%p322_p8, %s320_s25), 3 }
  0x5e   : > { %s1143_s11 = sshll.u32 %s1981_s25, 6  ;;  %p1145_p0 = scmp.ne.s32.totalorder %s333_s24, 1 }
  0x5f   : > { %s327_s12 = sadd.s32 %s1143_s11, %s1973_s23 }
  0x60   : > { %s1144_s3 = sshll.u32 %s327_s12, 3  ;;  %337 = sbr.rel (%p1145_p0) target bundleno = 118 (0x76), region = 44 }
  0x61   : > { %s1679_s28 = scalar_lea.vmem %s1944_s7, %s1144_s3 }
  0x65   : > { %vm338_vm0 = vcmask 64512   ;;  %v1507_v0 = vmov 0.0  }
  0x66   : > { %339 = vst.msk [vmem:[#allocation2] sm:$0xff] %vm338_vm0, %v1507_v0  ;;  %340 = vst.msk [vmem:[#allocation2 + $0x8] sm:$0xff] %vm338_vm0, %v1507_v0 }
  0x67   : > { %341 = vst.msk [vmem:[#allocation2 + $0x10] sm:$0xff] %vm338_vm0, %v1507_v0  ;;  %342 = vst.msk [vmem:[#allocation2 + $0x18] sm:$0xff] %vm338_vm0, %v1507_v0 }
  0x68   : > { %343 = vst.msk [vmem:[#allocation2 + $0x20] sm:$0xff] %vm338_vm0, %v1507_v0  ;;  %344 = vst.msk [vmem:[#allocation2 + $0x28] sm:$0xff] %vm338_vm0, %v1507_v0 }
  0x69   : > { %345 = vst.msk [vmem:[#allocation2 + $0x30] sm:$0xff] %vm338_vm0, %v1507_v0  ;;  %346 = vst.msk [vmem:[#allocation2 + $0x38] sm:$0xff] %vm338_vm0, %v1507_v0 }
  0x6a   : > { %347 = vst.msk [vmem:[#allocation2 + $0x40] sm:$0xff] %vm338_vm0, %v1507_v0  ;;  %348 = vst.msk [vmem:[#allocation2 + $0x48] sm:$0xff] %vm338_vm0, %v1507_v0 }
  0x6b   : > { %349 = vst.msk [vmem:[#allocation2 + $0x50] sm:$0xff] %vm338_vm0, %v1507_v0  ;;  %350 = vst.msk [vmem:[#allocation2 + $0x58] sm:$0xff] %vm338_vm0, %v1507_v0 }
  0x6c   : > { %351 = vst.msk [vmem:[#allocation2 + $0x60] sm:$0xff] %vm338_vm0, %v1507_v0  ;;  %352 = vst.msk [vmem:[#allocation2 + $0x68] sm:$0xff] %vm338_vm0, %v1507_v0 }
  0x6d   : > { %353 = vst.msk [vmem:[#allocation2 + $0x70] sm:$0xff] %vm338_vm0, %v1507_v0  ;;  %354 = vst.msk [vmem:[#allocation2 + $0x78] sm:$0xff] %vm338_vm0, %v1507_v0 }
  0x6e   : > { %355 = vst.msk [vmem:[#allocation2 + $0x80] sm:$0xff] %vm338_vm0, %v1507_v0  ;;  %356 = vst.msk [vmem:[#allocation2 + $0x88] sm:$0xff] %vm338_vm0, %v1507_v0 }
  0x6f   : > { %357 = vst.msk [vmem:[#allocation2 + $0x90] sm:$0xff] %vm338_vm0, %v1507_v0  ;;  %358 = vst.msk [vmem:[#allocation2 + $0x98] sm:$0xff] %vm338_vm0, %v1507_v0 }
  0x70   : > { %359 = vst.msk [vmem:[#allocation2 + $0xa0] sm:$0xff] %vm338_vm0, %v1507_v0  ;;  %360 = vst.msk [vmem:[#allocation2 + $0xa8] sm:$0xff] %vm338_vm0, %v1507_v0 }
  0x71   : > { %361 = vst.msk [vmem:[#allocation2 + $0xb0] sm:$0xff] %vm338_vm0, %v1507_v0  ;;  %362 = vst.msk [vmem:[#allocation2 + $0xb8] sm:$0xff] %vm338_vm0, %v1507_v0 }
  0x72   : > { %363 = vst.msk [vmem:[#allocation2 + $0xc0] sm:$0xff] %vm338_vm0, %v1507_v0  ;;  %364 = vst.msk [vmem:[#allocation2 + $0xc8] sm:$0xff] %vm338_vm0, %v1507_v0 }
  0x73   : > { %365 = vst.msk [vmem:[#allocation2 + $0xd0] sm:$0xff] %vm338_vm0, %v1507_v0  ;;  %366 = vst.msk [vmem:[#allocation2 + $0xd8] sm:$0xff] %vm338_vm0, %v1507_v0 }
  0x74   : > { %367 = vst.msk [vmem:[#allocation2 + $0xe0] sm:$0xff] %vm338_vm0, %v1507_v0  ;;  %368 = vst.msk [vmem:[#allocation2 + $0xe8] sm:$0xff] %vm338_vm0, %v1507_v0 }
  0x75   : > { %369 = vst.msk [vmem:[#allocation2 + $0xf0] sm:$0xff] %vm338_vm0, %v1507_v0  ;;  %370 = vst.msk [vmem:[#allocation2 + $0xf8] sm:$0xff] %vm338_vm0, %v1507_v0 }
  0x76 PF: > { %v1342_v1 = vld [vmem:[%s1674_s10 + $0x38] sm:$0xff]   ;;  %v1343_v2 = vld [vmem:[%s1674_s10 + $0x30] sm:$0xff]   ;;  %v1344_v3 = vld [vmem:[%s1674_s10 + $0x28] sm:$0xff]   ;;  %s1738_s3 = sld [smem:[#allocation6 + %s1482_s16]]  ;;  %vm788_vm1 = vcmask 64512  }
  0x77   : > { %1200 = vmatprep.subr.bf16.mxu0 %v1342_v1  ;;  %1248 = vmatprep.subr.bf16.mxu1 %v1342_v1  ;;  %v1345_v4 = vld [vmem:[%s1674_s10 + $0x20] sm:$0xff]   ;;  %v1346_v7 = vld [vmem:[%s1674_s10 + $0x18] sm:$0xff]   ;;  %v1347_v8 = vld [vmem:[%s1674_s10 + $0x10] sm:$0xff]  }
  0x78   : > { %1201 = vmatpush3.bf16.msra.mxu0 %v1342_v1  ;;  %1256 = vmatpush3.bf16.msra.mxu1 %v1342_v1  ;;  %v1350_v5 = vld [vmem:[%s1647_s13] sm:$0xff]   ;;  %v1348_v9 = vld [vmem:[%s1674_s10 + $0x8] sm:$0xff]   ;;  %v1354_v13 = vld [vmem:[%s1647_s13 + $0x10] sm:$0xff]  }
  0x79   : > { %1202 = vmatprep.subr.bf16.mxu0 %v1343_v2  ;;  %1249 = vmatprep.subr.bf16.mxu1 %v1343_v2  ;;  %v1351_v6 = vld [vmem:[%s1647_s13 + $0x40] sm:$0xff]   ;;  %v1352_v11 = vld [vmem:[%s1647_s13 + $0x8] sm:$0xff]   ;;  %v1355_v14 = vld [vmem:[%s1647_s13 + $0x50] sm:$0xff]  }
  0x7a   : > { %1216 = vmatprep.mubr.bf16.mxu0 %v1350_v5  ;;  %1232 = vmatprep.mubr.bf16.mxu1 %v1351_v6  ;;  %v1349_v10 = vld [vmem:[%s1674_s10] sm:$0xff]   ;;  %v1353_v12 = vld [vmem:[%s1647_s13 + $0x48] sm:$0xff]   ;;  %v1356_v15 = vld [vmem:[%s1647_s13 + $0x18] sm:$0xff]  }
  0x7b   : > { %v1357_v16 = vld [vmem:[%s1647_s13 + $0x58] sm:$0xff]   ;;  %v1358_v17 = vld [vmem:[%s1647_s13 + $0x20] sm:$0xff]   ;;  %v1360_v19 = vld [vmem:[%s1647_s13 + $0x28] sm:$0xff]  }
  0x7c   : > { %1203 = vmatpush3.bf16.msra.mxu0 %v1343_v2  ;;  %1257 = vmatpush3.bf16.msra.mxu1 %v1343_v2  ;;  %v1359_v18 = vld [vmem:[%s1647_s13 + $0x60] sm:$0xff]   ;;  %v1361_v20 = vld [vmem:[%s1647_s13 + $0x68] sm:$0xff]   ;;  %v1362_v21 = vld [vmem:[%s1647_s13 + $0x30] sm:$0xff]   ;;  %p1170_p1 = scmp.ne.s32.totalorder %s1738_s3, 1 }
  0x7d   : > { %1204 = vmatprep.subr.bf16.mxu0 %v1344_v3  ;;  %1250 = vmatprep.subr.bf16.mxu1 %v1344_v3  ;;  %v1363_v22 = vld [vmem:[%s1647_s13 + $0x70] sm:$0xff]   ;;  %v1364_v23 = vld [vmem:[%s1647_s13 + $0x38] sm:$0xff]   ;;  %v371_v29 = vld [vmem:[#allocation2] sm:$0xff] }
  0x7e   : > { %v1365_v24 = vld [vmem:[%s1647_s13 + $0x78] sm:$0xff]   ;;  %v373_v25 = vld [vmem:[#allocation2 + $0x10] sm:$0xff]  ;;  %v387_v30 = vld [vmem:[#allocation2 + $0x80] sm:$0xff] }
  0x7f   : > { %v389_v26 = vld [vmem:[#allocation2 + $0x90] sm:$0xff]  ;;  %v374_v35 = vld [vmem:[#allocation2 + $0x18] sm:$0xff]  ;;  %v372_v41 = vld [vmem:[#allocation2 + $0x8] sm:$0xff] }
  0x80   : > { %1205 = vmatpush3.bf16.msra.mxu0 %v1344_v3  ;;  %1258 = vmatpush3.bf16.msra.mxu1 %v1344_v3  ;;  %v390_v36 = vld [vmem:[#allocation2 + $0x98] sm:$0xff]  ;;  %v388_v42 = vld [vmem:[#allocation2 + $0x88] sm:$0xff]  ;;  %v377_v47 = vld [vmem:[#allocation2 + $0x30] sm:$0xff] }
  0x81   : > { %1206 = vmatprep.subr.bf16.mxu0 %v1345_v4  ;;  %1251 = vmatprep.subr.bf16.mxu1 %v1345_v4  ;;  %v393_v48 = vld [vmem:[#allocation2 + $0xb0] sm:$0xff]  ;;  %v375_v53 = vld [vmem:[#allocation2 + $0x20] sm:$0xff]  ;;  %v378_v59 = vld [vmem:[#allocation2 + $0x38] sm:$0xff] }
  0x82   : > { %v391_v54 = vld [vmem:[#allocation2 + $0xa0] sm:$0xff]  ;;  %v394_v60 = vld [vmem:[#allocation2 + $0xb8] sm:$0xff]  ;;  %v376_v1 = vld [vmem:[#allocation2 + $0x28] sm:$0xff] }
  0x83   : > { %v392_v2 = vld [vmem:[#allocation2 + $0xa8] sm:$0xff] }
  0x84   : > { %1207 = vmatpush3.bf16.msra.mxu0 %v1345_v4  ;;  %1259 = vmatpush3.bf16.msra.mxu1 %v1345_v4 }
  0x85   : > { %1208 = vmatprep.subr.bf16.mxu0 %v1346_v7  ;;  %1252 = vmatprep.subr.bf16.mxu1 %v1346_v7 }
  0x88   : > { %1209 = vmatpush3.bf16.msra.mxu0 %v1346_v7  ;;  %1260 = vmatpush3.bf16.msra.mxu1 %v1346_v7  ;;  %v381_v7 = vld [vmem:[#allocation2 + $0x50] sm:$0xff] }
  0x89   : > { %1210 = vmatprep.subr.bf16.mxu0 %v1347_v8  ;;  %1253 = vmatprep.subr.bf16.mxu1 %v1347_v8 }
  0x8c   : > { %1211 = vmatpush3.bf16.msra.mxu0 %v1347_v8  ;;  %1261 = vmatpush3.bf16.msra.mxu1 %v1347_v8  ;;  %v397_v8 = vld [vmem:[#allocation2 + $0xd0] sm:$0xff] }
  0x8d   : > { %1212 = vmatprep.subr.bf16.mxu0 %v1348_v9  ;;  %1254 = vmatprep.subr.bf16.mxu1 %v1348_v9 }
  0x90   : > { %1213 = vmatpush3.bf16.msra.mxu0 %v1348_v9  ;;  %1262 = vmatpush3.bf16.msra.mxu1 %v1348_v9 }
  0x91   : > { %1214 = vmatprep.subr.bf16.mxu0 %v1349_v10  ;;  %1255 = vmatprep.subr.bf16.mxu1 %v1349_v10 }
  0x94   : > { %1215 = vmatpush3.bf16.msra.mxu0 %v1349_v10  ;;  %1263 = vmatpush3.bf16.msra.mxu1 %v1349_v10 }
  0x97   : > { %1217 = vmatmul.mubr.bf16.vlgmr.msra.gmra.mxu0 %v1352_v11  ;;  %1233 = vmatmul.mubr.bf16.vlgmr.msra.gmra.mxu1 %v1353_v12 }
  0x98   : > { %1220 = vmatprep.mubr.bf16.mxu0 %v1354_v13  ;;  %1236 = vmatprep.mubr.bf16.mxu1 %v1355_v14  ;;  %v379_v13 = vld [vmem:[#allocation2 + $0x40] sm:$0xff] }
  0x99   : > { %v395_v14 = vld [vmem:[#allocation2 + $0xc0] sm:$0xff] }
  0x9f   : > { %1221 = vmatmul.mubr.bf16.gmra.mxu0 %v1356_v15  ;;  %1237 = vmatmul.mubr.bf16.gmra.mxu1 %v1357_v16 }
  0xa0   : > { %1224 = vmatprep.mubr.bf16.mxu0 %v1358_v17  ;;  %1240 = vmatprep.mubr.bf16.mxu1 %v1359_v18 }
  0xa7   : > { %1225 = vmatmul.mubr.bf16.gmra.mxu0 %v1360_v19  ;;  %1241 = vmatmul.mubr.bf16.gmra.mxu1 %v1361_v20  ;;  %v382_v19 = vld [vmem:[#allocation2 + $0x58] sm:$0xff] }
  0xa8   : > { %1228 = vmatprep.mubr.bf16.mxu0 %v1362_v21  ;;  %1244 = vmatprep.mubr.bf16.mxu1 %v1363_v22  ;;  %v398_v20 = vld [vmem:[#allocation2 + $0xd8] sm:$0xff] }
  0xaf   : > { %1229 = vmatmul.mubr.bf16.gmra.mxu0 %v1364_v23  ;;  %1245 = vmatmul.mubr.bf16.gmra.mxu1 %v1365_v24 }
 0x157   : > { %v1218_v27 = vpop.f32.mrf.mxu0  ;;  %v1234_v28 = vpop.f32.mrf.mxu1 }
 0x158   : > { %v758_v31 = vadd.f32 %v1218_v27, %v373_v25  ;;  %v774_v32 = vadd.f32 %v1234_v28, %v389_v26  ;;  %v380_v25 = vld [vmem:[#allocation2 + $0x48] sm:$0xff] }
 0x159   : > { %v629_v33 = vpop.f32.mrf.mxu0  ;;  %v693_v34 = vpop.f32.mrf.mxu1  ;;  %v396_v26 = vld [vmem:[#allocation2 + $0xc8] sm:$0xff] }
 0x15a   : > { %791 = vst.msk [vmem:[#allocation2 + $0x10] sm:$0xff] %vm788_vm1, %v758_v31  ;;  %807 = vst.msk [vmem:[#allocation2 + $0x90] sm:$0xff] %vm788_vm1, %v774_v32  ;;  %v756_v37 = vadd.f32 %v629_v33, %v371_v29  ;;  %v772_v38 = vadd.f32 %v693_v34, %v387_v30  ;;  %v385_v31 = vld [vmem:[#allocation2 + $0x70] sm:$0xff] }
 0x15b   : > { %v1219_v39 = vpop.f32.mrf.mxu0  ;;  %v1235_v40 = vpop.f32.mrf.mxu1  ;;  %v401_v32 = vld [vmem:[#allocation2 + $0xf0] sm:$0xff] }
 0x15c   : > { %789 = vst.msk [vmem:[#allocation2] sm:$0xff] %vm788_vm1, %v756_v37  ;;  %805 = vst.msk [vmem:[#allocation2 + $0x80] sm:$0xff] %vm788_vm1, %v772_v38  ;;  %v759_v43 = vadd.f32 %v1219_v39, %v374_v35  ;;  %v775_v44 = vadd.f32 %v1235_v40, %v390_v36  ;;  %v383_v37 = vld [vmem:[#allocation2 + $0x60] sm:$0xff] }
 0x15d   : > { %v632_v45 = vpop.f32.mrf.mxu0  ;;  %v696_v46 = vpop.f32.mrf.mxu1  ;;  %v399_v38 = vld [vmem:[#allocation2 + $0xe0] sm:$0xff] }
 0x15e   : > { %792 = vst.msk [vmem:[#allocation2 + $0x18] sm:$0xff] %vm788_vm1, %v759_v43  ;;  %808 = vst.msk [vmem:[#allocation2 + $0x98] sm:$0xff] %vm788_vm1, %v775_v44  ;;  %v757_v49 = vadd.f32 %v632_v45, %v372_v41  ;;  %v773_v50 = vadd.f32 %v696_v46, %v388_v42  ;;  %v386_v43 = vld [vmem:[#allocation2 + $0x78] sm:$0xff] }
 0x15f   : > { %v1222_v51 = vpop.f32.mrf.mxu0  ;;  %v1238_v52 = vpop.f32.mrf.mxu1  ;;  %v402_v44 = vld [vmem:[#allocation2 + $0xf8] sm:$0xff] }
 0x160   : > { %790 = vst.msk [vmem:[#allocation2 + $0x8] sm:$0xff] %vm788_vm1, %v757_v49  ;;  %806 = vst.msk [vmem:[#allocation2 + $0x88] sm:$0xff] %vm788_vm1, %v773_v50  ;;  %v762_v55 = vadd.f32 %v1222_v51, %v377_v47  ;;  %v778_v56 = vadd.f32 %v1238_v52, %v393_v48  ;;  %v384_v49 = vld [vmem:[#allocation2 + $0x68] sm:$0xff] }
 0x161   : > { %v645_v57 = vpop.f32.mrf.mxu0  ;;  %v709_v58 = vpop.f32.mrf.mxu1  ;;  %v400_v50 = vld [vmem:[#allocation2 + $0xe8] sm:$0xff] }
 0x162   : > { %795 = vst.msk [vmem:[#allocation2 + $0x30] sm:$0xff] %vm788_vm1, %v762_v55  ;;  %811 = vst.msk [vmem:[#allocation2 + $0xb0] sm:$0xff] %vm788_vm1, %v778_v56  ;;  %v760_v61 = vadd.f32 %v645_v57, %v375_v53  ;;  %v776_v62 = vadd.f32 %v709_v58, %v391_v54 }
 0x163   : > { %v1223_v63 = vpop.f32.mrf.mxu0  ;;  %v1239_v0 = vpop.f32.mrf.mxu1 }
 0x164   : > { %793 = vst.msk [vmem:[#allocation2 + $0x20] sm:$0xff] %vm788_vm1, %v760_v61  ;;  %809 = vst.msk [vmem:[#allocation2 + $0xa0] sm:$0xff] %vm788_vm1, %v776_v62  ;;  %v763_v3 = vadd.f32 %v1223_v63, %v378_v59  ;;  %v779_v4 = vadd.f32 %v1239_v0, %v394_v60 }
 0x165   : > { %v648_v5 = vpop.f32.mrf.mxu0  ;;  %v712_v6 = vpop.f32.mrf.mxu1 }
 0x166   : > { %796 = vst.msk [vmem:[#allocation2 + $0x38] sm:$0xff] %vm788_vm1, %v763_v3  ;;  %812 = vst.msk [vmem:[#allocation2 + $0xb8] sm:$0xff] %vm788_vm1, %v779_v4  ;;  %v761_v9 = vadd.f32 %v648_v5, %v376_v1  ;;  %v777_v10 = vadd.f32 %v712_v6, %v392_v2 }
 0x167   : > { %v1226_v11 = vpop.f32.mrf.mxu0  ;;  %v1242_v12 = vpop.f32.mrf.mxu1 }
 0x168   : > { %794 = vst.msk [vmem:[#allocation2 + $0x28] sm:$0xff] %vm788_vm1, %v761_v9  ;;  %810 = vst.msk [vmem:[#allocation2 + $0xa8] sm:$0xff] %vm788_vm1, %v777_v10  ;;  %v766_v15 = vadd.f32 %v1226_v11, %v381_v7  ;;  %v782_v16 = vadd.f32 %v1242_v12, %v397_v8 }
 0x169   : > { %v661_v17 = vpop.f32.mrf.mxu0  ;;  %v725_v18 = vpop.f32.mrf.mxu1 }
 0x16a   : > { %799 = vst.msk [vmem:[#allocation2 + $0x50] sm:$0xff] %vm788_vm1, %v766_v15  ;;  %815 = vst.msk [vmem:[#allocation2 + $0xd0] sm:$0xff] %vm788_vm1, %v782_v16  ;;  %v764_v21 = vadd.f32 %v661_v17, %v379_v13  ;;  %v780_v22 = vadd.f32 %v725_v18, %v395_v14 }
 0x16b   : > { %v1227_v23 = vpop.f32.mrf.mxu0  ;;  %v1243_v24 = vpop.f32.mrf.mxu1 }
 0x16c   : > { %797 = vst.msk [vmem:[#allocation2 + $0x40] sm:$0xff] %vm788_vm1, %v764_v21  ;;  %813 = vst.msk [vmem:[#allocation2 + $0xc0] sm:$0xff] %vm788_vm1, %v780_v22  ;;  %v767_v27 = vadd.f32 %v1227_v23, %v382_v19  ;;  %v783_v28 = vadd.f32 %v1243_v24, %v398_v20 }
 0x16d   : > { %v664_v29 = vpop.f32.mrf.mxu0  ;;  %v728_v30 = vpop.f32.mrf.mxu1 }
 0x16e   : > { %800 = vst.msk [vmem:[#allocation2 + $0x58] sm:$0xff] %vm788_vm1, %v767_v27  ;;  %816 = vst.msk [vmem:[#allocation2 + $0xd8] sm:$0xff] %vm788_vm1, %v783_v28  ;;  %v765_v33 = vadd.f32 %v664_v29, %v380_v25  ;;  %v781_v34 = vadd.f32 %v728_v30, %v396_v26 }
 0x16f   : > { %v1230_v35 = vpop.f32.mrf.mxu0  ;;  %v1246_v36 = vpop.f32.mrf.mxu1 }
 0x170   : > { %798 = vst.msk [vmem:[#allocation2 + $0x48] sm:$0xff] %vm788_vm1, %v765_v33  ;;  %814 = vst.msk [vmem:[#allocation2 + $0xc8] sm:$0xff] %vm788_vm1, %v781_v34  ;;  %v770_v39 = vadd.f32 %v1230_v35, %v385_v31  ;;  %v786_v40 = vadd.f32 %v1246_v36, %v401_v32 }
 0x171   : > { %v677_v41 = vpop.f32.mrf.mxu0  ;;  %v741_v42 = vpop.f32.mrf.mxu1 }
 0x172   : > { %803 = vst.msk [vmem:[#allocation2 + $0x70] sm:$0xff] %vm788_vm1, %v770_v39  ;;  %819 = vst.msk [vmem:[#allocation2 + $0xf0] sm:$0xff] %vm788_vm1, %v786_v40  ;;  %v768_v45 = vadd.f32 %v677_v41, %v383_v37  ;;  %v784_v46 = vadd.f32 %v741_v42, %v399_v38 }
 0x173   : > { %v1231_v47 = vpop.f32.mrf.mxu0  ;;  %v1247_v48 = vpop.f32.mrf.mxu1 }
 0x174   : > { %801 = vst.msk [vmem:[#allocation2 + $0x60] sm:$0xff] %vm788_vm1, %v768_v45  ;;  %817 = vst.msk [vmem:[#allocation2 + $0xe0] sm:$0xff] %vm788_vm1, %v784_v46  ;;  %v771_v51 = vadd.f32 %v1231_v47, %v386_v43  ;;  %v787_v52 = vadd.f32 %v1247_v48, %v402_v44  ;;  %825 = sbr.rel (%p1170_p1) target bundleno = 408 (0x198), region = 48 }
 0x175   : > { %v680_v53 = vpop.f32.mrf.mxu0  ;;  %v744_v54 = vpop.f32.mrf.mxu1 }
 0x176   : > { %804 = vst.msk [vmem:[#allocation2 + $0x78] sm:$0xff] %vm788_vm1, %v771_v51  ;;  %820 = vst.msk [vmem:[#allocation2 + $0xf8] sm:$0xff] %vm788_vm1, %v787_v52  ;;  %v769_v55 = vadd.f32 %v680_v53, %v384_v49  ;;  %v785_v56 = vadd.f32 %v744_v54, %v400_v50 }
 0x178   : > { %802 = vst.msk [vmem:[#allocation2 + $0x68] sm:$0xff] %vm788_vm1, %v769_v55  ;;  %818 = vst.msk [vmem:[#allocation2 + $0xe8] sm:$0xff] %vm788_vm1, %v785_v56 }
 0x179   : > { %v826_v57 = vld [vmem:[#allocation2] sm:$0xff]  ;;  %v827_v61 = vld [vmem:[#allocation2 + $0x8] sm:$0xff]  ;;  %v828_v62 = vld [vmem:[#allocation2 + $0x10] sm:$0xff] }
 0x17a   : > { %v1778_v58 = vld [vmem:[%s313_s17] ss:$0 sm:$0xff]  ;;  %v829_v63 = vld [vmem:[#allocation2 + $0x18] sm:$0xff]  ;;  %v831_v4 = vld [vmem:[#allocation2 + $0x28] sm:$0xff] }
 0x17b   : > { %v1785_v59 = vld [vmem:[%s318_s30] ss:$0 sm:$0xff]  ;;  %v865_v60 = vmul.f32 %v1778_v58, %v826_v57  ;;  %v866_v0 = vmul.f32 %v1778_v58, %v827_v61  ;;  %v867_v1 = vmul.f32 %v1778_v58, %v828_v62  ;;  %v868_v2 = vmul.f32 %v1778_v58, %v829_v63  ;;  %v832_v5 = vld [vmem:[#allocation2 + $0x30] sm:$0xff]  ;;  %v833_v10 = vld [vmem:[#allocation2 + $0x38] sm:$0xff] }
 0x17c   : > { %v830_v3 = vld [vmem:[#allocation2 + $0x20] sm:$0xff]  ;;  %v870_v8 = vmul.f32 %v1778_v58, %v831_v4  ;;  %v871_v9 = vmul.f32 %v1778_v58, %v832_v5  ;;  %v872_v14 = vmul.f32 %v1778_v58, %v833_v10  ;;  %v835_v20 = vld [vmem:[#allocation2 + $0x48] sm:$0xff]  ;;  %v836_v21 = vld [vmem:[#allocation2 + $0x50] sm:$0xff] }
 0x17d   : > { %v904_v6 = vadd.f32 %v1785_v59, %v865_v60  ;;  %v869_v7 = vmul.f32 %v1778_v58, %v830_v3  ;;  %v905_v11 = vadd.f32 %v1785_v59, %v866_v0  ;;  %v906_v12 = vadd.f32 %v1785_v59, %v867_v1  ;;  %v834_v15 = vld [vmem:[#allocation2 + $0x40] sm:$0xff]  ;;  %v837_v22 = vld [vmem:[#allocation2 + $0x58] sm:$0xff]  ;;  %v840_v29 = vld [vmem:[#allocation2 + $0x70] sm:$0xff] }
 0x17e   : > { %v907_v13 = vadd.f32 %v1785_v59, %v868_v2  ;;  %v909_v18 = vadd.f32 %v1785_v59, %v870_v8  ;;  %v910_v19 = vadd.f32 %v1785_v59, %v871_v9  ;;  %v911_v26 = vadd.f32 %v1785_v59, %v872_v14  ;;  %v838_v27 = vld [vmem:[#allocation2 + $0x60] sm:$0xff]  ;;  %v841_v34 = vld [vmem:[#allocation2 + $0x78] sm:$0xff]  ;;  %v843_v52 = vld [vmem:[#allocation2 + $0x88] sm:$0xff] }
 0x17f   : > { %v936_v16 = vmax.f32 %v904_v6, 0.0  ;;  %v908_v17 = vadd.f32 %v1785_v59, %v869_v7  ;;  %v937_v23 = vmax.f32 %v905_v11, 0.0  ;;  %v938_v24 = vmax.f32 %v906_v12, 0.0  ;;  %v839_v28 = vld [vmem:[#allocation2 + $0x68] sm:$0xff]  ;;  %v842_v47 = vld [vmem:[#allocation2 + $0x80] sm:$0xff]  ;;  %v844_v53 = vld [vmem:[#allocation2 + $0x90] sm:$0xff] }
 0x180   : > { %v939_v25 = vmax.f32 %v907_v13, 0.0  ;;  %v941_v31 = vmax.f32 %v909_v18, 0.0  ;;  %v942_v32 = vmax.f32 %v910_v19, 0.0  ;;  %v873_v33 = vmul.f32 %v1778_v58, %v834_v15  ;;  %v845_v54 = vld [vmem:[#allocation2 + $0x98] sm:$0xff]  ;;  %v846_v61 = vld [vmem:[#allocation2 + $0xa0] sm:$0xff]  ;;  %v847_v62 = vld [vmem:[#allocation2 + $0xa8] sm:$0xff] }
 0x181   : > { %968 = vst.msk [vmem:[%s1679_s28] sm:$0xff] %vm788_vm1, %v936_v16  ;;  %v940_v30 = vmax.f32 %v908_v17, 0.0  ;;  %969 = vst.msk [vmem:[%s1679_s28 + $0x8] sm:$0xff] %vm788_vm1, %v937_v23  ;;  %v943_v35 = vmax.f32 %v911_v26, 0.0  ;;  %v874_v36 = vmul.f32 %v1778_v58, %v835_v20  ;;  %v875_v37 = vmul.f32 %v1778_v58, %v836_v21  ;;  %v848_v63 = vld [vmem:[#allocation2 + $0xb0] sm:$0xff]  ;;  %v849_v4 = vld [vmem:[#allocation2 + $0xb8] sm:$0xff] }
 0x182   : > { %970 = vst.msk [vmem:[%s1679_s28 + $0x10] sm:$0xff] %vm788_vm1, %v938_v24  ;;  %971 = vst.msk [vmem:[%s1679_s28 + $0x18] sm:$0xff] %vm788_vm1, %v939_v25  ;;  %v876_v38 = vmul.f32 %v1778_v58, %v837_v22  ;;  %v912_v39 = vadd.f32 %v1785_v59, %v873_v33  ;;  %v877_v40 = vmul.f32 %v1778_v58, %v838_v27  ;;  %v850_v17 = vld [vmem:[#allocation2 + $0xc0] sm:$0xff]  ;;  %v851_v22 = vld [vmem:[#allocation2 + $0xc8] sm:$0xff] }
 0x183   : > { %972 = vst.msk [vmem:[%s1679_s28 + $0x20] sm:$0xff] %vm788_vm1, %v940_v30  ;;  %973 = vst.msk [vmem:[%s1679_s28 + $0x28] sm:$0xff] %vm788_vm1, %v941_v31  ;;  %v878_v41 = vmul.f32 %v1778_v58, %v839_v28  ;;  %v879_v42 = vmul.f32 %v1778_v58, %v840_v29  ;;  %v913_v43 = vadd.f32 %v1785_v59, %v874_v36  ;;  %v852_v23 = vld [vmem:[#allocation2 + $0xd0] sm:$0xff]  ;;  %v853_v24 = vld [vmem:[#allocation2 + $0xd8] sm:$0xff] }
 0x184   : > { %974 = vst.msk [vmem:[%s1679_s28 + $0x30] sm:$0xff] %vm788_vm1, %v942_v32  ;;  %975 = vst.msk [vmem:[%s1679_s28 + $0x38] sm:$0xff] %vm788_vm1, %v943_v35  ;;  %v914_v44 = vadd.f32 %v1785_v59, %v875_v37  ;;  %v915_v45 = vadd.f32 %v1785_v59, %v876_v38  ;;  %v880_v46 = vmul.f32 %v1778_v58, %v841_v34  ;;  %v944_v48 = vmax.f32 %v912_v39, 0.0  ;;  %v854_v29 = vld [vmem:[#allocation2 + $0xe0] sm:$0xff]  ;;  %v855_v30 = vld [vmem:[#allocation2 + $0xe8] sm:$0xff] }
 0x185   : > { %v916_v49 = vadd.f32 %v1785_v59, %v877_v40  ;;  %v917_v50 = vadd.f32 %v1785_v59, %v878_v41  ;;  %v918_v51 = vadd.f32 %v1785_v59, %v879_v42  ;;  %v945_v55 = vmax.f32 %v913_v43, 0.0  ;;  %v856_v31 = vld [vmem:[#allocation2 + $0xf0] sm:$0xff]  ;;  %v857_v36 = vld [vmem:[#allocation2 + $0xf8] sm:$0xff] }
 0x186   : > { %v946_v56 = vmax.f32 %v914_v44, 0.0  ;;  %v947_v57 = vmax.f32 %v915_v45, 0.0  ;;  %v919_v60 = vadd.f32 %v1785_v59, %v880_v46  ;;  %976 = vst.msk [vmem:[%s1679_s28 + $0x40] sm:$0xff] %vm788_vm1, %v944_v48  ;;  %v881_v3 = vmul.f32 %v1778_v58, %v842_v47 }
 0x187   : > { %v948_v0 = vmax.f32 %v916_v49, 0.0  ;;  %v949_v1 = vmax.f32 %v917_v50, 0.0  ;;  %v950_v2 = vmax.f32 %v918_v51, 0.0  ;;  %977 = vst.msk [vmem:[%s1679_s28 + $0x48] sm:$0xff] %vm788_vm1, %v945_v55  ;;  %v882_v6 = vmul.f32 %v1778_v58, %v843_v52 }
 0x188   : > { %978 = vst.msk [vmem:[%s1679_s28 + $0x50] sm:$0xff] %vm788_vm1, %v946_v56  ;;  %979 = vst.msk [vmem:[%s1679_s28 + $0x58] sm:$0xff] %vm788_vm1, %v947_v57  ;;  %v951_v5 = vmax.f32 %v919_v60, 0.0  ;;  %v883_v7 = vmul.f32 %v1778_v58, %v844_v53  ;;  %v884_v8 = vmul.f32 %v1778_v58, %v845_v54  ;;  %v920_v9 = vadd.f32 %v1785_v59, %v881_v3 }
 0x189   : > { %980 = vst.msk [vmem:[%s1679_s28 + $0x60] sm:$0xff] %vm788_vm1, %v948_v0  ;;  %981 = vst.msk [vmem:[%s1679_s28 + $0x68] sm:$0xff] %vm788_vm1, %v949_v1  ;;  %v885_v10 = vmul.f32 %v1778_v58, %v846_v61  ;;  %v886_v11 = vmul.f32 %v1778_v58, %v847_v62  ;;  %v887_v12 = vmul.f32 %v1778_v58, %v848_v63 }
 0x18a   : > { %982 = vst.msk [vmem:[%s1679_s28 + $0x70] sm:$0xff] %vm788_vm1, %v950_v2  ;;  %983 = vst.msk [vmem:[%s1679_s28 + $0x78] sm:$0xff] %vm788_vm1, %v951_v5  ;;  %v921_v13 = vadd.f32 %v1785_v59, %v882_v6  ;;  %v922_v14 = vadd.f32 %v1785_v59, %v883_v7  ;;  %v923_v15 = vadd.f32 %v1785_v59, %v884_v8  ;;  %v952_v18 = vmax.f32 %v920_v9, 0.0 }
 0x18b   : > { %v888_v16 = vmul.f32 %v1778_v58, %v849_v4  ;;  %v924_v19 = vadd.f32 %v1785_v59, %v885_v10  ;;  %v925_v20 = vadd.f32 %v1785_v59, %v886_v11  ;;  %v926_v21 = vadd.f32 %v1785_v59, %v887_v12 }
 0x18c   : > { %v953_v25 = vmax.f32 %v921_v13, 0.0  ;;  %v954_v26 = vmax.f32 %v922_v14, 0.0  ;;  %v955_v27 = vmax.f32 %v923_v15, 0.0  ;;  %984 = vst.msk [vmem:[%s1679_s28 + $0x80] sm:$0xff] %vm788_vm1, %v952_v18  ;;  %v889_v35 = vmul.f32 %v1778_v58, %v850_v17 }
 0x18d   : > { %v927_v28 = vadd.f32 %v1785_v59, %v888_v16  ;;  %v956_v32 = vmax.f32 %v924_v19, 0.0  ;;  %v957_v33 = vmax.f32 %v925_v20, 0.0  ;;  %v958_v34 = vmax.f32 %v926_v21, 0.0 }
 0x18e   : > { %985 = vst.msk [vmem:[%s1679_s28 + $0x88] sm:$0xff] %vm788_vm1, %v953_v25  ;;  %986 = vst.msk [vmem:[%s1679_s28 + $0x90] sm:$0xff] %vm788_vm1, %v954_v26  ;;  %v890_v38 = vmul.f32 %v1778_v58, %v851_v22  ;;  %v891_v39 = vmul.f32 %v1778_v58, %v852_v23  ;;  %v892_v40 = vmul.f32 %v1778_v58, %v853_v24 }
 0x18f   : > { %987 = vst.msk [vmem:[%s1679_s28 + $0x98] sm:$0xff] %vm788_vm1, %v955_v27  ;;  %v959_v37 = vmax.f32 %v927_v28, 0.0  ;;  %988 = vst.msk [vmem:[%s1679_s28 + $0xa0] sm:$0xff] %vm788_vm1, %v956_v32  ;;  %v928_v41 = vadd.f32 %v1785_v59, %v889_v35  ;;  %v893_v42 = vmul.f32 %v1778_v58, %v854_v29  ;;  %v894_v43 = vmul.f32 %v1778_v58, %v855_v30 }
 0x190   : > { %989 = vst.msk [vmem:[%s1679_s28 + $0xa8] sm:$0xff] %vm788_vm1, %v957_v33  ;;  %990 = vst.msk [vmem:[%s1679_s28 + $0xb0] sm:$0xff] %vm788_vm1, %v958_v34  ;;  %v895_v44 = vmul.f32 %v1778_v58, %v856_v31  ;;  %v929_v45 = vadd.f32 %v1785_v59, %v890_v38  ;;  %v930_v46 = vadd.f32 %v1785_v59, %v891_v39 }
 0x191   : > { %991 = vst.msk [vmem:[%s1679_s28 + $0xb8] sm:$0xff] %vm788_vm1, %v959_v37  ;;  %v931_v47 = vadd.f32 %v1785_v59, %v892_v40  ;;  %v896_v48 = vmul.f32 %v1778_v58, %v857_v36  ;;  %v960_v49 = vmax.f32 %v928_v41, 0.0  ;;  %v932_v50 = vadd.f32 %v1785_v59, %v893_v42 }
 0x192   : > { %v933_v51 = vadd.f32 %v1785_v59, %v894_v43  ;;  %v934_v52 = vadd.f32 %v1785_v59, %v895_v44  ;;  %v961_v53 = vmax.f32 %v929_v45, 0.0  ;;  %v962_v54 = vmax.f32 %v930_v46, 0.0 }
 0x193   : > { %v963_v55 = vmax.f32 %v931_v47, 0.0  ;;  %v935_v56 = vadd.f32 %v1785_v59, %v896_v48  ;;  %992 = vst.msk [vmem:[%s1679_s28 + $0xc0] sm:$0xff] %vm788_vm1, %v960_v49  ;;  %v964_v57 = vmax.f32 %v932_v50, 0.0 }
 0x194   : > { %v965_v58 = vmax.f32 %v933_v51, 0.0  ;;  %v966_v60 = vmax.f32 %v934_v52, 0.0  ;;  %993 = vst.msk [vmem:[%s1679_s28 + $0xc8] sm:$0xff] %vm788_vm1, %v961_v53  ;;  %994 = vst.msk [vmem:[%s1679_s28 + $0xd0] sm:$0xff] %vm788_vm1, %v962_v54 }
 0x195   : > { %995 = vst.msk [vmem:[%s1679_s28 + $0xd8] sm:$0xff] %vm788_vm1, %v963_v55  ;;  %v967_v61 = vmax.f32 %v935_v56, 0.0  ;;  %996 = vst.msk [vmem:[%s1679_s28 + $0xe0] sm:$0xff] %vm788_vm1, %v964_v57 }
 0x196   : > { %997 = vst.msk [vmem:[%s1679_s28 + $0xe8] sm:$0xff] %vm788_vm1, %v965_v58  ;;  %998 = vst.msk [vmem:[%s1679_s28 + $0xf0] sm:$0xff] %vm788_vm1, %v966_v60 }
 0x197   : > { %999 = vst.msk [vmem:[%s1679_s28 + $0xf8] sm:$0xff] %vm788_vm1, %v967_v61 }
 0x198 PF: > { %s34_s20 = sadd.s32 1, %s1498_s20   ;;  %s1958_s17 = sld [smem:[#allocation11_spill]] }
 0x199   : > { %p31_p2 = scmp.ge.s32.totalorder %s34_s20, 10   ;;  %s1959_s23 = sld [smem:[#allocation12_spill]] }
 0x19a   : > { %s1960_s19 = sld [smem:[#allocation13_spill]]  ;;  %s1961_s14 = smov %s1474_s15 }
 0x19b   : > { %s1962_s15 = smov %s1478_s2  ;;  %s1963_s2 = smov %s1624_s0 }
 0x19c   : > { %s1964_s16 = smov %s1490_s18  ;;  %33 = sbr.rel (!%p31_p2) target bundleno = 41 (0x29), region = 93 }
 0x19f   : > { %s1965_s18 = smov %s1959_s23 }
 0x1a1   :  { %1033 = vsyncpa [#allocation8], 1 }
 0x1a2   :  { %1035 = vsyncpa [#allocation8 + $0x1], 1 }

</bundles_post_ra>
